<compile_context>
chip_gen: v5e
topology: v5e:2x2
jax: 0.10.0
libtpu: 0.0.40
codegen_flags: <defaults>
</compile_context>

<pallas_src>
import math

import jax
import jax.numpy as jnp
from jax.experimental import pallas as pl
from jax.experimental.pallas import tpu as pltpu


def _round_up(x, m):
    return ((x + m - 1) // m) * m


# --------------------------------------------------------------------------- #
# Kernel
# --------------------------------------------------------------------------- #
def hnn_kernel(x_ref, w1t_ref, w1sym_ref, b1_ref, o_ref):
    """One batch tile of the closed-form HNN symplectic gradient.

    x      : (TB, k*D)    packed batch rows (k original rows per 128-lane row)
    w1t    : (k*D, k*Hp)  block-diagonal W1^T                       (matmul dtype)
    w1sym  : (k*Hp, k*D)  block-diagonal [W1[:,n:], -W1[:,:n]] pre-scaled by w2
    b1     : (1, k*Hp)    tiled bias                                (f32)
    out    : (TB, k*D)    [gradH[:, n:], -gradH[:, :n]] packed like x
    """
    x = x_ref[...]
    # hidden pre-activation: MXU matmul, f32 accumulate (W1 arrives pre-transposed)
    z = jnp.dot(x, w1t_ref[...], preferred_element_type=jnp.float32) + b1_ref[...]
    t = jnp.tanh(z)        # EUP; kept f32 (v5e has no bf16 EUP) for accuracy on all chips
    s = 1.0 - t * t        # VPU; the w2 scaling is folded into w1sym (one-time, host side)
    out = jnp.dot(s.astype(w1sym_ref.dtype), w1sym_ref[...],
                  preferred_element_type=jnp.float32)
    o_ref[...] = out.astype(o_ref.dtype)   # single lane-dense store (last dim % 128 == 0)


# --------------------------------------------------------------------------- #
# One-time weight preprocessing (hoisted out of the per-step forward)
# --------------------------------------------------------------------------- #
def prepare_hnn_params(w1, b1, w2, *, matmul_dtype=jnp.bfloat16):
    """w1: (H, D) with D = 2n;  b1, w2: (1, H) or (H,).  Run once, reuse forever."""
    H, D = w1.shape
    n = D // 2

    # pack k batch rows per 128-lane row when D is small
    k = 128 // D if (D <= 128 and 128 % D == 0) else 1

    # pad hidden width so the packed hidden dim k*Hp is a multiple of 128 lanes
    m = 128 // math.gcd(k, 128)
    Hp = _round_up(max(H, m), m)
    pad = Hp - H

    w1p = jnp.pad(w1.astype(jnp.float32), ((0, pad), (0, 0)))                     # (Hp, D)
    b1p = jnp.pad(jnp.reshape(b1, (1, H)).astype(jnp.float32), ((0, 0), (0, pad)))
    w2p = jnp.pad(jnp.reshape(w2, (1, H)).astype(jnp.float32), ((0, 0), (0, pad)))

    # z = x @ W1^T + b1  ->  pre-transpose W1 (no in-kernel relayout)
    w1t = w1p.T                                                                   # (D, Hp)
    # out = [gradH[:,n:], -gradH[:,:n]] = (1 - t^2) @ (w2^T * [W1[:,n:], -W1[:,:n]])
    # -> symplectic cat/negate AND w2 scaling folded into one weight, in f32.
    w1sym = w2p.T * jnp.concatenate([w1p[:, n:], -w1p[:, :n]], axis=1)            # (Hp, D)

    # block-diagonal expansion so k packed rows are processed independently
    eye = jnp.eye(k, dtype=jnp.float32)
    w1t_bd = jnp.kron(eye, w1t)                                                   # (k*D, k*Hp)
    w1sym_bd = jnp.kron(eye, w1sym)                                               # (k*Hp, k*D)
    b1_bd = jnp.tile(b1p, (1, k))                                                 # (1, k*Hp)

    if matmul_dtype is not None:
        w1t_bd = w1t_bd.astype(matmul_dtype)
        w1sym_bd = w1sym_bd.astype(matmul_dtype)

    return dict(w1t=w1t_bd, w1sym=w1sym_bd, b1=b1_bd,
                k=k, D=D, Hp=Hp, matmul_dtype=matmul_dtype)


# --------------------------------------------------------------------------- #
# Forward
# --------------------------------------------------------------------------- #
def hnn_forward(x, params, *, block_rows=1024, vmem_budget_bytes=40 * 2**20):
    """x: (B, D) with D = 2n; params from prepare_hnn_params."""
    B, D = x.shape
    assert D == params["D"], "x feature dim does not match prepared params"
    k, Hp = params["k"], params["Hp"]
    mm_dtype = params["matmul_dtype"]
    out_dtype = x.dtype

    kD, kHp = k * D, k * Hp
    x_in = x.astype(mm_dtype) if mm_dtype is not None else x
    x_bytes = jnp.dtype(x_in.dtype).itemsize
    w_bytes = jnp.dtype(params["w1t"].dtype).itemsize
    o_bytes = jnp.dtype(out_dtype).itemsize

    # ---- tile sizing over packed batch rows ---------------------------------
    granule = 16 if x_bytes < 4 else 8          # bf16 sublane tile is (16, 128)
    rows_needed = pl.cdiv(B, k)

    # cap the tile so the grid has >= 2 steps whenever possible (v7x megacore)
    tb = min(_round_up(block_rows, granule),
             _round_up(pl.cdiv(rows_needed, 2), granule))
    tb = max(tb, granule)

    def vmem_est(t):
        io = 2 * t * kD * (x_bytes + o_bytes)            # double-buffered x + out tiles
        wts = (kD * kHp + kHp * kD) * w_bytes + kHp * 4  # single-buffered weights + bias
        inter = 3 * t * kHp * 4                          # z / t / s f32 intermediates
        return io + wts + inter

    while tb > granule and vmem_est(tb) > vmem_budget_bytes:
        tb = max(granule, _round_up(tb // 2, granule))

    rows = _round_up(rows_needed, tb)
    grid = (rows // tb,)

    # zero-pad the batch so every tile holds valid data (no garbage in partial tiles)
    b_pad = rows * k
    x_packed = jnp.pad(x_in, ((0, b_pad - B), (0, 0))).reshape(rows, kD)

    cost = pl.CostEstimate(
        flops=4 * rows * kD * kHp,                       # two matmuls per row
        transcendentals=rows * kHp,                      # tanh
        bytes_accessed=rows * kD * (x_bytes + o_bytes)
        + 2 * kD * kHp * w_bytes + kHp * 4)

    vmem_limit = int(min(56 * 2**20, max(32 * 2**20, int(1.25 * vmem_est(tb)))))

    def run(single_buffered_weights):
        def wspec(shape):
            imap = lambda i: (0, 0)
            if single_buffered_weights and hasattr(pl, "Buffered"):
                return pl.BlockSpec(shape, imap, pipeline_mode=pl.Buffered(1))
            return pl.BlockSpec(shape, imap)

        return pl.pallas_call(
            hnn_kernel,
            out_shape=jax.ShapeDtypeStruct((rows, kD), out_dtype),
            grid=grid,
            in_specs=[
                pl.BlockSpec((tb, kD), lambda i: (i, 0)),   # x: tiled along packed batch
                wspec((kD, kHp)),                           # W1^T (block-diag): resident
                wspec((kHp, kD)),                           # W1_sym*w2 (block-diag): resident
                wspec((1, kHp)),                            # b1 (tiled): resident
            ],
            out_specs=pl.BlockSpec((tb, kD), lambda i: (i, 0)),
            compiler_params=pltpu.CompilerParams(
                dimension_semantics=("parallel",),          # shard batch tiles across TCs
                vmem_limit_bytes=vmem_limit),
            cost_estimate=cost,
        )(x_packed, params["w1t"], params["w1sym"], params["b1"])

    try:
        out_packed = run(True)      # single-buffered weights (halves weight VMEM footprint)
    except Exception:               # graceful fallback for Pallas versions w/o Buffered(1)
        out_packed = run(False)

    return out_packed.reshape(b_pad, D)[:B]


# --------------------------------------------------------------------------- #
# Pure-JAX reference (same math as torch.autograd.grad of the MLP)
# --------------------------------------------------------------------------- #
def hnn_reference(x, w1, b1, w2):
    z = x @ w1.T + jnp.reshape(b1, (1, -1))
    t = jnp.tanh(z)
    gradH = ((1.0 - t * t) * jnp.reshape(w2, (1, -1))) @ w1
    n = x.shape[1] // 2
    return jnp.concatenate([gradH[:, n:], -gradH[:, :n]], axis=1)


if __name__ == "__main__":
    key = jax.random.PRNGKey(0)
    kx, kw1, kb1, kw2 = jax.random.split(key, 4)

    B = 256        # batch (packed 8 rows/lane-row -> 32 packed rows -> 2 grid steps)
    D = 16         # state dim = 2n -> n = 8 ; k = 128 // 16 = 8
    HID = 32       # hidden width of the MLP `net`

    x = jax.random.normal(kx, (B, D), dtype=jnp.float32)
    w1 = jax.random.normal(kw1, (HID, D), dtype=jnp.float32) * 0.1
    b1 = jax.random.normal(kb1, (1, HID), dtype=jnp.float32) * 0.1
    w2 = jax.random.normal(kw2, (1, HID), dtype=jnp.float32) * 0.1
    # (second-layer bias b2 does not affect dH/dx, so it is omitted)

    ref = hnn_reference(x, w1, b1, w2)

    # exact f32 matmul path (weights prepared once, reused across calls)
    params_f32 = prepare_hnn_params(w1, b1, w2, matmul_dtype=None)
    out = jax.block_until_ready(hnn_forward(x, params_f32))
    assert out.shape == (B, D)
    assert out.dtype == x.dtype
    assert jnp.allclose(out, ref, atol=1e-5, rtol=1e-5), "f32 mismatch vs reference"

    # default bf16 matmul-operand path (MXU fast path; elementwise/accumulate stay f32)
    params_bf16 = prepare_hnn_params(w1, b1, w2)
    out_bf16 = jax.block_until_ready(hnn_forward(x, params_bf16))
    assert out_bf16.shape == (B, D)
    assert jnp.allclose(out_bf16.astype(jnp.float32), ref, atol=5e-3, rtol=5e-2), \
        "bf16 mismatch vs reference"

    print("KERNEL_OK")
</pallas_src>

<mosaic_0001>
module attributes {stable_mosaic.version = 11 : i64} {
  func.func @hnn_kernel(%arg0: i32, %arg1: memref<16x128xf32, #tpu.memory_space<vmem>>, %arg2: memref<128x256xf32, #tpu.memory_space<vmem>>, %arg3: memref<256x128xf32, #tpu.memory_space<vmem>>, %arg4: memref<1x256xf32, #tpu.memory_space<vmem>>, %arg5: memref<16x128xf32, #tpu.memory_space<vmem>>) attributes {dimension_semantics = [#tpu.dimension_semantics<parallel>], iteration_bounds = array<i64: 2>, scalar_prefetch = 0 : i64, scratch_operands = 0 : i64, tpu.core_type = #tpu.core_type<tc>, window_params = [{transform_indices = @transform_0, window_bounds = array<i64: 16, 128>}, {pipeline_mode = #tpu.pipeline_mode<synchronous>, transform_indices = @transform_1, window_bounds = array<i64: 128, 256>}, {pipeline_mode = #tpu.pipeline_mode<synchronous>, transform_indices = @transform_2, window_bounds = array<i64: 256, 128>}, {pipeline_mode = #tpu.pipeline_mode<synchronous>, transform_indices = @transform_3, window_bounds = array<i64: 1, 256>}, {transform_indices = @transform_4, window_bounds = array<i64: 16, 128>}]} {
    %c0 = arith.constant 0 : index
    %c0_0 = arith.constant 0 : index
    %0 = vector.load %arg1[%c0, %c0_0] : memref<16x128xf32, #tpu.memory_space<vmem>>, vector<16x128xf32>
    %c0_1 = arith.constant 0 : index
    %c0_2 = arith.constant 0 : index
    %1 = vector.load %arg2[%c0_1, %c0_2] : memref<128x256xf32, #tpu.memory_space<vmem>>, vector<128x256xf32>
    %cst = arith.constant dense<0.000000e+00> : vector<16x256xf32>
    %2 = tpu.matmul %0, %1, %cst {dimension_numbers = #tpu.dot_dimension_numbers<[1], [0], [0], [1], [0, 0, 1, 1], [], []>} : vector<16x128xf32>, vector<128x256xf32>, vector<16x256xf32> -> vector<16x256xf32>
    %c0_3 = arith.constant 0 : index
    %c0_4 = arith.constant 0 : index
    %3 = vector.load %arg4[%c0_3, %c0_4] : memref<1x256xf32, #tpu.memory_space<vmem>>, vector<1x256xf32>
    %4 = vector.broadcast %3 : vector<1x256xf32> to vector<16x256xf32>
    %5 = arith.addf %2, %4 : vector<16x256xf32>
    %6 = math.tanh %5 : vector<16x256xf32>
    %7 = arith.mulf %6, %6 : vector<16x256xf32>
    %cst_5 = arith.constant 1.000000e+00 : f32
    %8 = vector.broadcast %cst_5 : f32 to vector<16x256xf32>
    %9 = arith.subf %8, %7 : vector<16x256xf32>
    %c0_6 = arith.constant 0 : index
    %c0_7 = arith.constant 0 : index
    %10 = vector.load %arg3[%c0_6, %c0_7] : memref<256x128xf32, #tpu.memory_space<vmem>>, vector<256x128xf32>
    %cst_8 = arith.constant dense<0.000000e+00> : vector<16x128xf32>
    %11 = tpu.matmul %9, %10, %cst_8 {dimension_numbers = #tpu.dot_dimension_numbers<[1], [0], [0], [1], [0, 0, 1, 1], [], []>} : vector<16x256xf32>, vector<256x128xf32>, vector<16x128xf32> -> vector<16x128xf32>
    %c0_9 = arith.constant 0 : index
    %c0_10 = arith.constant 0 : index
    %12 = vector.load %arg5[%c0_9, %c0_10] : memref<16x128xf32, #tpu.memory_space<vmem>>, vector<16x128xf32>
    tpu.vector_store %arg5[%c0_9, %c0_10], %11 {strides = array<i32>} : memref<16x128xf32, #tpu.memory_space<vmem>>, vector<16x128xf32>,
    return
  }
  func.func @transform_0(%arg0: i32) -> (i32, i32) {
    %c0_i32 = arith.constant 0 : i32
    %c0_i32_0 = arith.constant 0 : i32
    return %arg0, %c0_i32 : i32, i32
  }
  func.func @transform_1(%arg0: i32) -> (i32, i32) {
    %c0_i32 = arith.constant 0 : i32
    %c0_i32_0 = arith.constant 0 : i32
    %c0_i32_1 = arith.constant 0 : i32
    return %c0_i32, %c0_i32_0 : i32, i32
  }
  func.func @transform_2(%arg0: i32) -> (i32, i32) {
    %c0_i32 = arith.constant 0 : i32
    %c0_i32_0 = arith.constant 0 : i32
    %c0_i32_1 = arith.constant 0 : i32
    return %c0_i32, %c0_i32_0 : i32, i32
  }
  func.func @transform_3(%arg0: i32) -> (i32, i32) {
    %c0_i32 = arith.constant 0 : i32
    %c0_i32_0 = arith.constant 0 : i32
    %c0_i32_1 = arith.constant 0 : i32
    return %c0_i32, %c0_i32_0 : i32, i32
  }
  func.func @transform_4(%arg0: i32) -> (i32, i32) {
    %c0_i32 = arith.constant 0 : i32
    %c0_i32_0 = arith.constant 0 : i32
    return %arg0, %c0_i32 : i32, i32
  }
}

module attributes {stable_mosaic.version = 11 : i64} {
  func.func @hnn_kernel(%arg0: i32, %arg1: memref<16x128xf32, #tpu.memory_space<vmem>>, %arg2: memref<128x256xf32, #tpu.memory_space<vmem>>, %arg3: memref<256x128xf32, #tpu.memory_space<vmem>>, %arg4: memref<1x256xf32, #tpu.memory_space<vmem>>, %arg5: memref<16x128xf32, #tpu.memory_space<vmem>>) attributes {dimension_semantics = [#tpu.dimension_semantics<parallel>], iteration_bounds = array<i64: 2>, scalar_prefetch = 0 : i64, scratch_operands = 0 : i64, tpu.core_type = #tpu.core_type<tc>, window_params = [{transform_indices = @transform_0, window_bounds = array<i64: 16, 128>}, {pipeline_mode = #tpu.pipeline_mode<synchronous>, transform_indices = @transform_1, window_bounds = array<i64: 128, 256>}, {pipeline_mode = #tpu.pipeline_mode<synchronous>, transform_indices = @transform_2, window_bounds = array<i64: 256, 128>}, {pipeline_mode = #tpu.pipeline_mode<synchronous>, transform_indices = @transform_3, window_bounds = array<i64: 1, 256>}, {transform_indices = @transform_4, window_bounds = array<i64: 16, 128>}]} {
    %c0 = arith.constant 0 : index
    %c0_0 = arith.constant 0 : index
    %0 = vector.load %arg1[%c0, %c0_0] : memref<16x128xf32, #tpu.memory_space<vmem>>, vector<16x128xf32>
    %c0_1 = arith.constant 0 : index
    %c0_2 = arith.constant 0 : index
    %1 = vector.load %arg2[%c0_1, %c0_2] : memref<128x256xf32, #tpu.memory_space<vmem>>, vector<128x256xf32>
    %cst = arith.constant dense<0.000000e+00> : vector<16x256xf32>
    %2 = tpu.matmul %0, %1, %cst {dimension_numbers = #tpu.dot_dimension_numbers<[1], [0], [0], [1], [0, 0, 1, 1], [], []>} : vector<16x128xf32>, vector<128x256xf32>, vector<16x256xf32> -> vector<16x256xf32>
    %c0_3 = arith.constant 0 : index
    %c0_4 = arith.constant 0 : index
    %3 = vector.load %arg4[%c0_3, %c0_4] : memref<1x256xf32, #tpu.memory_space<vmem>>, vector<1x256xf32>
    %4 = vector.broadcast %3 : vector<1x256xf32> to vector<16x256xf32>
    %5 = arith.addf %2, %4 : vector<16x256xf32>
    %6 = math.tanh %5 : vector<16x256xf32>
    %7 = arith.mulf %6, %6 : vector<16x256xf32>
    %cst_5 = arith.constant 1.000000e+00 : f32
    %8 = vector.broadcast %cst_5 : f32 to vector<16x256xf32>
    %9 = arith.subf %8, %7 : vector<16x256xf32>
    %c0_6 = arith.constant 0 : index
    %c0_7 = arith.constant 0 : index
    %10 = vector.load %arg3[%c0_6, %c0_7] : memref<256x128xf32, #tpu.memory_space<vmem>>, vector<256x128xf32>
    %cst_8 = arith.constant dense<0.000000e+00> : vector<16x128xf32>
    %11 = tpu.matmul %9, %10, %cst_8 {dimension_numbers = #tpu.dot_dimension_numbers<[1], [0], [0], [1], [0, 0, 1, 1], [], []>} : vector<16x256xf32>, vector<256x128xf32>, vector<16x128xf32> -> vector<16x128xf32>
    %c0_9 = arith.constant 0 : index
    %c0_10 = arith.constant 0 : index
    %12 = vector.load %arg5[%c0_9, %c0_10] : memref<16x128xf32, #tpu.memory_space<vmem>>, vector<16x128xf32>
    tpu.vector_store %arg5[%c0_9, %c0_10], %11 {strides = array<i32>} : memref<16x128xf32, #tpu.memory_space<vmem>>, vector<16x128xf32>,
    return
  }
  func.func @transform_0(%arg0: i32) -> (i32, i32) {
    %c0_i32 = arith.constant 0 : i32
    %c0_i32_0 = arith.constant 0 : i32
    return %arg0, %c0_i32 : i32, i32
  }
  func.func @transform_1(%arg0: i32) -> (i32, i32) {
    %c0_i32 = arith.constant 0 : i32
    %c0_i32_0 = arith.constant 0 : i32
    %c0_i32_1 = arith.constant 0 : i32
    return %c0_i32, %c0_i32_0 : i32, i32
  }
  func.func @transform_2(%arg0: i32) -> (i32, i32) {
    %c0_i32 = arith.constant 0 : i32
    %c0_i32_0 = arith.constant 0 : i32
    %c0_i32_1 = arith.constant 0 : i32
    return %c0_i32, %c0_i32_0 : i32, i32
  }
  func.func @transform_3(%arg0: i32) -> (i32, i32) {
    %c0_i32 = arith.constant 0 : i32
    %c0_i32_0 = arith.constant 0 : i32
    %c0_i32_1 = arith.constant 0 : i32
    return %c0_i32, %c0_i32_0 : i32, i32
  }
  func.func @transform_4(%arg0: i32) -> (i32, i32) {
    %c0_i32 = arith.constant 0 : i32
    %c0_i32_0 = arith.constant 0 : i32
    return %arg0, %c0_i32 : i32, i32
  }
}

</mosaic_0001>

<bundles_post_ra>
// kernel: tpu_custom_call.1
= control target key start
LH: loop header
LB: loop body
LE: loop exit
PB: predicated region body
PF: predicated region fallthrough
CT: control target
= control target key end

     0   :  { %9 = vsyncpa [#allocation3], 0  ;;  %s993_s0 = inlined_call_operand.hbm [shape: f32[32,128], index: 0, kind: input, shape index: {}]   ;;  %s994_s1 = inlined_call_operand.hbm [shape: f32[128,256], index: 1, kind: input, shape index: {}]   ;;  %s995_s2 = inlined_call_operand.hbm [shape: f32[256,128], index: 2, kind: input, shape index: {}]   ;;  %s996_s3 = inlined_call_operand.vmem [shape: f32[1,256], index: 3, kind: input, shape index: {}]   ;;  %s997_s4 = inlined_call_operand.hbm [shape: f32[32,128], index: 4, kind: output, shape index: {}]  }
   0x1   :  { %11 = vsyncpa [#allocation3 + $0x1], 0 }
   0x2   :  { %12 = vsyncpa [#allocation6], 0 }
   0x3   :  { %13 = vsyncpa [#allocation4], 0 }
   0x4   :  { %15 = vsyncpa [#allocation4 + $0x1], 0  ;;  %s835_s15 = smov 0   ;;  %s837_s16 = smov 0  }
   0x5   :  { %s839_s17 = smov 0   ;;  %s841_s18 = smov 0  }
   0x6 LB: > { %s856_s19 = sadd.s32 4294967295, %s800_s18   ;;  %s539_s20 = sadd.s32 4294967294, %s800_s18   ;;  %s800_s18 = sphi %s841_s18, %s1007_s18   ;;  %s796_s17 = sphi %s839_s17, %s1006_s17   ;;  %s792_s16 = sphi %s837_s16, %s1005_s16   ;;  %s788_s15 = sphi %s835_s15, %s1004_s15  }
   0x7   : > { %p41_p0 = scmp.ne.s32.totalorder %s792_s16, %s788_s15  ;;  %p42_p1 = scmp.eq.s32.totalorder %s856_s19, 0 }
   0x8   : > { %p128_p2 = scmp.eq.s32.totalorder %s856_s19, 1  ;;  %p134_p3 = scmp.eq.s32.totalorder %s539_s20, 1 }
   0x9   : > { %p865_p4 = por %p42_p1, %p41_p0  ;;  %p540_p5 = scmp.ge.s32.totalorder %s800_s18, 1 }
   0xa   : > { %p870_p6 = por %p134_p3, %p41_p0  ;;  %p141_p7 = scmp.lt.s32.totalorder %s800_s18, 3 }
   0xb   : > { %s152_s25 = sshll.u32 %s994_s1, 4  ;;  %s802_s27 = smov [#allocation5]   ;;  %s153_s25 = int_to_ptr.hbm [resolvable:$true] %s152_s25 }
   0xc   : > { %p878_p8 = pnand %p540_p5, %p141_p7  ;;  %s154_s28 = sshll.u32 %s802_s27, 4  ;;  %s155_s28 = int_to_ptr.vmem [resolvable:$true] %s154_s28 }
   0xd   : > { %s166_s5 = sshll.u32 %s995_s2, 4  ;;  %s803_s6 = smov 256   ;;  %s167_s5 = int_to_ptr.hbm [resolvable:$true] %s166_s5 }
   0xe   : > { %p571_p9 = pneg %p878_p8  ;;  %s804_s7 = smov 16  }
   0xf   : > { %s805_s8 = smov [#allocation7]   ;;  %s806_s10 = smov 128  }
  0x10   : > { %p572_p10 = pnand %p571_p9, %p42_p1  ;;  %s168_s9 = sshll.u32 %s805_s8, 4  ;;  %s169_s9 = int_to_ptr.vmem [resolvable:$true] %s168_s9 }
  0x11   : > { %s807_s11 = smov 8   ;;  %s894_s12 = sadd.s32 1, %s800_s18  }
  0x12   : > { %574 = dma.hbm_to_vmem [thread:$0]  (!%p572_p10), %s153_s25, 4096, %s155_s28, [#allocation6], %s803_s6, %s803_s6, %s804_s7  }
  0x13   : > { %577 = dma.hbm_to_vmem [thread:$0]  (!%p572_p10), %s167_s5, 4096, %s169_s9, [#allocation6], %s806_s10, %s806_s10, %s807_s11  }
  0x14   : > { %s25_s13 = ssub.s32 %s800_s18, %s894_s12  ;;  %s28_s14 = sadd.s32 1, %s796_s17 }
  0x15   : > { %p26_p12 = scmp.eq.s32.totalorder %s25_s13, 0  ;;  %p35_p13 = scmp.ne.s32.totalorder %s796_s17, %s792_s16 }
  0x16   : > { %p36_p0 = scmp.eq.s32.totalorder %s800_s18, 0  ;;  %p588_p7 = scmp.lt.s32.totalorder %s800_s18, 2 }
  0x17   : > { %s903_s20 = scalar_select %p26_p12, %s796_s17, %s28_s14  }
  0x18   : > { %p37_p3 = por %p36_p0, %p35_p13  ;;  %p907_p5 = por %p128_p2, %p35_p13 }
  0x19   : > { %s185_s24 = sand.u32 1, %s796_s17   ;;  %s557_s27 = sshll.u32 %s800_s18, 4 }
  0x1a   : > { %s544_s25 = sshll.u32 %s185_s24, 4  ;;  %s194_s30 = scalar_lea.hbm %s993_s0, %s557_s27 }
  0x1b   : > { %s189_s5 = scalar_lea.vmem [#allocation2], %s544_s25  ;;  %s195_s7 = sshll.u32 %s194_s30, 4  ;;  %s196_s7 = int_to_ptr.hbm [resolvable:$true] %s195_s7 }
  0x1c   : > { %s197_s6 = sshll.u32 %s189_s5, 4  ;;  %p917_p9 = pnand %p588_p7, %p37_p3  ;;  %s198_s6 = int_to_ptr.vmem [resolvable:$true] %s197_s6 }
  0x1d   : > { %s186_s9 = scalar_lea.sflag [#allocation3], %s185_s24  ;;  %s700_s13 = sshra.s32 %s196_s7, 4  ;;  %s701_s13 = int_to_ptr.hbm [resolvable:$true] %s700_s13 }
  0x1e   : > { %s702_s14 = scalar_lea.hbm %s701_s13, 16  ;;  %p704_p10 = pneg %p917_p9 }
  0x1f   : > { %p703_p2 = scmp.ne.s32.totalorder %s701_s13, %s702_s14  ;;  %s707_s28 = scalar_lea.hbm %s993_s0, 32 }
  0x20   : > { %p708_p0 = scmp.lt.s32.totalorder %s701_s13, %s993_s0  ;;  %p709_p3 = scmp.lt.s32.totalorder %s707_s28, %s702_s14 }
  0x21   : > { %p705_p12 = pnand %p704_p10, %p703_p2 }
  0x22   : > { %p710_p7 = por %p709_p3, %p708_p0 }
  0x23   : > { %p706_p13 = pneg %p705_p12 }
  0x25   : > { %p711_p11 = pnand %p710_p7, %p706_p13 }
  0x27   : > { %714 = shalt.err (!%p711_p11)
}
  0x28   : > { %581 = dma.hbm_to_vmem [thread:$0]  (!%p917_p9), %s196_s7, 256, %s198_s6, %s186_s9, %s806_s10, %s806_s10, %s807_s11  }
  0x29   : > { %209 = sbr.rel (%p878_p8) target bundleno = 367 (0x16f), region = 36  ;;  %s937_s24 = sand.u32 (!%p878_p8), 1, %s792_s16  }
  0x2a   : > { %s548_s5 = sshll.u32 (!%p878_p8), %s937_s24, 4  ;;  %s212_s13 = scalar_lea.sflag (!%p878_p8), [#allocation3], %s937_s24 }
  0x2b   : > { %s943_s14 = scalar_lea.vmem (!%p878_p8), [#allocation2], %s548_s5 }
  0x2e   : > { %775 = dma.done.wait (%p865_p4), %s212_s13, 256  }
  0x2f   : > { %777 = vsyncadd (%p865_p4), %s212_s13, 4294967040 }
  0x30   : > { %779 = dma.done.wait (%p42_p1), [#allocation6], 8192  }
  0x31   : > { %781 = vsyncadd (%p42_p1), [#allocation6], 4294959104  ;;  %v285_v0 = vld [vmem:[#allocation5 + $0xf0] sm:$0xff]  ;;  %v286_v1 = vld [vmem:[#allocation5 + $0xf8] sm:$0xff]  ;;  %s558_s10 = sshll.u32 %s856_s19, 4  ;;  %s250_s8 = scalar_lea.vmem [#allocation8], %s548_s5 }
  0x32   : > { %v283_v2 = vld [vmem:[#allocation5 + $0xe0] sm:$0xff]  ;;  %293 = vmatpush.msra.mxu0 %v285_v0  ;;  %316 = vmatpush.msra.mxu1 %v286_v1  ;;  %v284_v3 = vld [vmem:[#allocation5 + $0xe8] sm:$0xff]  ;;  %v281_v4 = vld [vmem:[#allocation5 + $0xd0] sm:$0xff]  ;;  %s443_s7 = scalar_lea.hbm %s997_s4, %s558_s10  ;;  %s444_s9 = sshll.u32 %s250_s8, 4  ;;  %s445_s9 = int_to_ptr.vmem [resolvable:$true] %s444_s9 }
  0x33   : > { %v282_v5 = vld [vmem:[#allocation5 + $0xd8] sm:$0xff]  ;;  %v279_v6 = vld [vmem:[#allocation5 + $0xc0] sm:$0xff]  ;;  %v280_v7 = vld [vmem:[#allocation5 + $0xc8] sm:$0xff]  ;;  %s446_s27 = sshll.u32 %s443_s7, 4  ;;  %s432_s25 = scalar_lea.sflag [#allocation4], %s937_s24  ;;  %s447_s27 = int_to_ptr.hbm [resolvable:$true] %s446_s27 }
  0x34   : > { %294 = vmatpush.msra.mxu0 %v283_v2  ;;  %317 = vmatpush.msra.mxu1 %v284_v3  ;;  %v277_v8 = vld [vmem:[#allocation5 + $0xb0] sm:$0xff]  ;;  %v278_v9 = vld [vmem:[#allocation5 + $0xb8] sm:$0xff]  ;;  %v275_v10 = vld [vmem:[#allocation5 + $0xa0] sm:$0xff]  ;;  %s744_s19 = sshra.s32 %s447_s27, 4  ;;  %s750_s5 = scalar_lea.hbm %s997_s4, 32  ;;  %s745_s19 = int_to_ptr.hbm [resolvable:$true] %s744_s19 }
  0x35   : > { %v276_v11 = vld [vmem:[#allocation5 + $0xa8] sm:$0xff]  ;;  %v273_v12 = vld [vmem:[#allocation5 + $0x90] sm:$0xff]  ;;  %v274_v13 = vld [vmem:[#allocation5 + $0x98] sm:$0xff]  ;;  %s746_s28 = scalar_lea.hbm %s745_s19, 16  ;;  %p751_p11 = scmp.lt.s32.totalorder %s745_s19, %s997_s4 }
  0x36   : > { %295 = vmatpush.msra.mxu0 %v281_v4  ;;  %318 = vmatpush.msra.mxu1 %v282_v5  ;;  %v271_v14 = vld [vmem:[#allocation5 + $0x80] sm:$0xff]  ;;  %v366_v15 = vld [vmem:[#allocation7 + $0x78] sm:$0xff]  ;;  %v272_v17 = vld [vmem:[#allocation5 + $0x88] sm:$0xff]  ;;  %p747_p1 = scmp.ne.s32.totalorder %s745_s19, %s746_s28  ;;  %p752_p9 = scmp.lt.s32.totalorder %s750_s5, %s746_s28 }
  0x37   : > { %v382_v16 = vld [vmem:[#allocation7 + $0xf8] sm:$0xff]  ;;  %383 = vmatpush.msra.mxu2 %v366_v15  ;;  %v365_v18 = vld [vmem:[#allocation7 + $0x70] sm:$0xff]  ;;  %v364_v20 = vld [vmem:[#allocation7 + $0x68] sm:$0xff] }
  0x38   : > { %296 = vmatpush.msra.mxu0 %v279_v6  ;;  %319 = vmatpush.msra.mxu1 %v280_v7  ;;  %v381_v19 = vld [vmem:[#allocation7 + $0xf0] sm:$0xff]  ;;  %v380_v21 = vld [vmem:[#allocation7 + $0xe8] sm:$0xff]  ;;  %v270_v23 = vld [vmem:[#allocation5 + $0x78] sm:$0xff]  ;;  %p748_p4 = pnand %p747_p1, %p907_p5  ;;  %p753_p2 = por %p752_p9, %p751_p11 }
  0x39   : > { %406 = vmatpush.msra.mxu3 %v382_v16  ;;  %v269_v22 = vld [vmem:[#allocation5 + $0x70] sm:$0xff]  ;;  %384 = vmatpush.msra.mxu2 %v365_v18  ;;  %v363_v24 = vld [vmem:[#allocation7 + $0x60] sm:$0xff]  ;;  %v268_v27 = vld [vmem:[#allocation5 + $0x68] sm:$0xff] }
  0x3a   : > { %297 = vmatpush.msra.mxu0 %v277_v8  ;;  %320 = vmatpush.msra.mxu1 %v278_v9  ;;  %v379_v25 = vld [vmem:[#allocation7 + $0xe0] sm:$0xff]  ;;  %v362_v28 = vld [vmem:[#allocation7 + $0x58] sm:$0xff]  ;;  %v265_v30 = vld [vmem:[#allocation5 + $0x50] sm:$0xff]  ;;  %p749_p8 = pneg %p748_p4 }
  0x3b   : > { %407 = vmatpush.msra.mxu3 %v381_v19  ;;  %v267_v26 = vld [vmem:[#allocation5 + $0x60] sm:$0xff]  ;;  %385 = vmatpush.msra.mxu2 %v364_v20  ;;  %v378_v29 = vld [vmem:[#allocation7 + $0xd8] sm:$0xff]  ;;  %v361_v32 = vld [vmem:[#allocation7 + $0x50] sm:$0xff] }
  0x3c   : > { %298 = vmatpush.msra.mxu0 %v275_v10  ;;  %321 = vmatpush.msra.mxu1 %v276_v11  ;;  %v266_v31 = vld [vmem:[#allocation5 + $0x58] sm:$0xff]  ;;  %v377_v33 = vld [vmem:[#allocation7 + $0xd0] sm:$0xff]  ;;  %v263_v34 = vld [vmem:[#allocation5 + $0x40] sm:$0xff]  ;;  %p754_p10 = pnand %p753_p2, %p749_p8 }
  0x3d   : > { %408 = vmatpush.msra.mxu3 %v380_v21  ;;  %386 = vmatpush.msra.mxu2 %v363_v24  ;;  %v264_v35 = vld [vmem:[#allocation5 + $0x48] sm:$0xff]  ;;  %v261_v38 = vld [vmem:[#allocation5 + $0x30] sm:$0xff]  ;;  %v262_v39 = vld [vmem:[#allocation5 + $0x38] sm:$0xff] }
  0x3e   : > { %299 = vmatpush.msra.mxu0 %v273_v12  ;;  %322 = vmatpush.msra.mxu1 %v274_v13  ;;  %v360_v36 = vld [vmem:[#allocation7 + $0x48] sm:$0xff]  ;;  %v359_v40 = vld [vmem:[#allocation7 + $0x40] sm:$0xff]  ;;  %v358_v44 = vld [vmem:[#allocation7 + $0x38] sm:$0xff] }
  0x3f   : > { %409 = vmatpush.msra.mxu3 %v379_v25  ;;  %387 = vmatpush.msra.mxu2 %v362_v28  ;;  %v376_v37 = vld [vmem:[#allocation7 + $0xc8] sm:$0xff]  ;;  %v375_v41 = vld [vmem:[#allocation7 + $0xc0] sm:$0xff]  ;;  %v374_v45 = vld [vmem:[#allocation7 + $0xb8] sm:$0xff] }
  0x40   : > { %300 = vmatpush.msra.mxu0 %v271_v14  ;;  %323 = vmatpush.msra.mxu1 %v272_v17  ;;  %v259_v42 = vld [vmem:[#allocation5 + $0x20] sm:$0xff]  ;;  %v260_v43 = vld [vmem:[#allocation5 + $0x28] sm:$0xff]  ;;  %v257_v46 = vld [vmem:[#allocation5 + $0x10] sm:$0xff] }
  0x41   : > { %410 = vmatpush.msra.mxu3 %v378_v29  ;;  %388 = vmatpush.msra.mxu2 %v361_v32  ;;  %v258_v47 = vld [vmem:[#allocation5 + $0x18] sm:$0xff]  ;;  %v255_v48 = vld [vmem:[#allocation5] sm:$0xff]  ;;  %v256_v49 = vld [vmem:[#allocation5 + $0x8] sm:$0xff] }
  0x42   : > { %301 = vmatpush.msra.mxu0 %v269_v22  ;;  %324 = vmatpush.msra.mxu1 %v270_v23  ;;  %v253_v50 = vld [vmem:[%s943_s14] sm:$0xff]  ;;  %v254_v51 = vld [vmem:[%s943_s14 + $0x8] sm:$0xff] }
  0x43   : > { %411 = vmatpush.msra.mxu3 %v377_v33  ;;  %389 = vmatpush.msra.mxu2 %v360_v36  ;;  %v357_v52 = vld [vmem:[#allocation7 + $0x30] sm:$0xff]  ;;  %v356_v54 = vld [vmem:[#allocation7 + $0x28] sm:$0xff]  ;;  %v355_v56 = vld [vmem:[#allocation7 + $0x20] sm:$0xff] }
  0x44   : > { %302 = vmatpush.msra.mxu0 %v267_v26  ;;  %325 = vmatpush.msra.mxu1 %v268_v27  ;;  %v373_v53 = vld [vmem:[#allocation7 + $0xb0] sm:$0xff]  ;;  %v372_v55 = vld [vmem:[#allocation7 + $0xa8] sm:$0xff]  ;;  %v371_v57 = vld [vmem:[#allocation7 + $0xa0] sm:$0xff] }
  0x45   : > { %412 = vmatpush.msra.mxu3 %v376_v37  ;;  %390 = vmatpush.msra.mxu2 %v359_v40  ;;  %v354_v58 = vld [vmem:[#allocation7 + $0x18] sm:$0xff]  ;;  %v353_v60 = vld [vmem:[#allocation7 + $0x10] sm:$0xff]  ;;  %v352_v62 = vld [vmem:[#allocation7 + $0x8] sm:$0xff] }
  0x46   : > { %303 = vmatpush.msra.mxu0 %v265_v30  ;;  %326 = vmatpush.msra.mxu1 %v266_v31  ;;  %v370_v59 = vld [vmem:[#allocation7 + $0x98] sm:$0xff]  ;;  %v369_v61 = vld [vmem:[#allocation7 + $0x90] sm:$0xff]  ;;  %v368_v63 = vld [vmem:[#allocation7 + $0x88] sm:$0xff] }
  0x47   : > { %413 = vmatpush.msra.mxu3 %v375_v41  ;;  %391 = vmatpush.msra.mxu2 %v358_v44  ;;  %v351_v0 = vld [vmem:[#allocation7] sm:$0xff] }
  0x48   : > { %304 = vmatpush.msra.mxu0 %v263_v34  ;;  %327 = vmatpush.msra.mxu1 %v264_v35  ;;  %v367_v1 = vld [vmem:[#allocation7 + $0x80] sm:$0xff] }
  0x49   : > { %414 = vmatpush.msra.mxu3 %v374_v45  ;;  %392 = vmatpush.msra.mxu2 %v357_v52  ;;  %v287_v2 = vld [vmem:[%s996_s3] sm:$0x3] }
  0x4a   : > { %305 = vmatpush.msra.mxu0 %v261_v38  ;;  %328 = vmatpush.msra.mxu1 %v262_v39  ;;  %v289_v3 = vperm.slane %v287_v2, 0  ;;  %v290_v4 = vperm.slane %v287_v2, 1 }
  0x4b   : > { %415 = vmatpush.msra.mxu3 %v373_v53  ;;  %393 = vmatpush.msra.mxu2 %v356_v54 }
  0x4c   : > { %306 = vmatpush.msra.mxu0 %v259_v42  ;;  %329 = vmatpush.msra.mxu1 %v260_v43 }
  0x4d   : > { %416 = vmatpush.msra.mxu3 %v372_v55  ;;  %394 = vmatpush.msra.mxu2 %v355_v56 }
  0x4e   : > { %307 = vmatpush.msra.mxu0 %v257_v46  ;;  %330 = vmatpush.msra.mxu1 %v258_v47 }
  0x4f   : > { %417 = vmatpush.msra.mxu3 %v371_v57  ;;  %395 = vmatpush.msra.mxu2 %v354_v58 }
  0x50   : > { %308 = vmatpush.msra.mxu0 %v255_v48  ;;  %331 = vmatpush.msra.mxu1 %v256_v49 }
  0x51   : > { %309 = vmatmul.f32.vlgmr.msra.gmra.mxu0 %v253_v50  ;;  %332 = vmatmul.f32.vlgmr.msra.gmra.mxu1 %v253_v50 }
  0x52   : > { %418 = vmatpush.msra.mxu3 %v370_v59  ;;  %396 = vmatpush.msra.mxu2 %v353_v60 }
  0x54   : > { %419 = vmatpush.msra.mxu3 %v369_v61  ;;  %397 = vmatpush.msra.mxu2 %v352_v62 }
  0x56   : > { %420 = vmatpush.msra.mxu3 %v368_v63  ;;  %398 = vmatpush.msra.mxu2 %v351_v0 }
  0x58   : > { %421 = vmatpush.msra.mxu3 %v367_v1 }
  0x59   : > { %312 = vmatmul.f32.gmra.mxu0 %v254_v51  ;;  %335 = vmatmul.f32.gmra.mxu1 %v254_v51 }
  0xce   : > { %v310_v5 = vpop.f32.mrf.mxu0  ;;  %v333_v6 = vpop.f32.mrf.mxu1 }
  0xcf   : > { %v311_v7 = vadd.f32 %v310_v5, %v289_v3  ;;  %v334_v8 = vadd.f32 %v333_v6, %v290_v4 }
  0xd1   : > { %632 = vtanh.f32 %v311_v7 }
  0xd2   : > { %634 = vtanh.f32 %v334_v8 }
  0xd6   : > { %v313_v9 = vpop.f32.mrf.mxu0  ;;  %v336_v10 = vpop.f32.mrf.mxu1 }
  0xd7   : > { %v633_v11 = vpop.eup %632  ;;  %v314_v12 = vadd.f32 %v313_v9, %v289_v3  ;;  %v337_v13 = vadd.f32 %v336_v10, %v290_v4 }
  0xd8   : > { %v635_v14 = vpop.eup %634  ;;  %v343_v15 = vmul.f32 %v633_v11, %v633_v11 }
  0xd9   : > { %636 = vtanh.f32 %v314_v12  ;;  %v344_v16 = vmul.f32 %v635_v14, %v635_v14 }
  0xda   : > { %638 = vtanh.f32 %v337_v13  ;;  %v347_v17 = vsub.f32 1.0, %v343_v15 }
  0xdb   : > { %v348_v18 = vsub.f32 1.0, %v344_v16 }
  0xdc   : > { %399 = vmatmul.f32.vlgmr.msra.gmra.mxu2 %v347_v17 }
  0xdd   : > { %422 = vmatmul.f32.vlgmr.msra.gmra.mxu3 %v348_v18 }
  0xdf   : > { %v637_v19 = vpop.eup %636 }
  0xe0   : > { %v639_v20 = vpop.eup %638  ;;  %v345_v21 = vmul.f32 %v637_v19, %v637_v19 }
  0xe1   : > { %v346_v22 = vmul.f32 %v639_v20, %v639_v20 }
  0xe2   : > { %v349_v23 = vsub.f32 1.0, %v345_v21 }
  0xe3   : > { %v350_v24 = vsub.f32 1.0, %v346_v22 }
  0xe4   : > { %402 = vmatmul.f32.gmra.mxu2 %v349_v23 }
  0xe5   : > { %425 = vmatmul.f32.gmra.mxu3 %v350_v24 }
 0x15f   : > { %v400_v25 = vpop.f32.mrf.mxu2 }
 0x160   : > { %v423_v26 = vpop.f32.mrf.mxu3 }
 0x161   : > { %v424_v27 = vadd.f32 %v423_v26, %v400_v25 }
 0x163   : > { %429 = vst [vmem:[%s250_s8] sm:$0xff] %v424_v27 }
 0x167   : > { %v403_v28 = vpop.f32.mrf.mxu2 }
 0x168   : > { %v426_v29 = vpop.f32.mrf.mxu3 }
 0x169   : > { %v427_v30 = vadd.f32 %v426_v29, %v403_v28 }
 0x16b   : > { %430 = vst [vmem:[%s250_s8 + $0x8] sm:$0xff] %v427_v30 }
 0x16c   : > { %757 = shalt.err (!%p754_p10)
}
 0x16d   : > { %s808_s24 = smov 128   ;;  %s809_s21 = smov 8  }
 0x16e   : > { %569 = dma.vmem_to_hbm [thread:$0]  (%p907_p5), %s445_s9, 256, %s447_s27, %s432_s25, %s808_s24, %s808_s24, %s809_s21  }
 0x16f PF: > { %s461_s26 = sand.u32 1, %s788_s15   ;;  %p1003_p12 = scmp.ge.s32.totalorder %s800_s18, 2 }
 0x170   : > { %s462_s10 = scalar_lea.sflag [#allocation4], %s461_s26 }
 0x171   : > { %p583_p13 = pnand %p1003_p12, %p870_p6 }
 0x173   : > { %p584_p0 = pneg %p583_p13 }
 0x175   : > { %783 = dma.done.wait (%p584_p0), %s462_s10, 256  }
 0x176   : > { %785 = vsyncadd (%p584_p0), %s462_s10, 4294967040  ;;  %p18_p3 = scmp.ge.s32.totalorder %s894_s12, 4   ;;  %s1004_s15 = smov %s792_s16 }
 0x177   : > { %s1005_s16 = smov %s796_s17  ;;  %s1006_s17 = smov %s903_s20 }
 0x178   : > { %s1007_s18 = smov %s894_s12  ;;  %20 = sbr.rel (!%p18_p3) target bundleno = 6 (0x6), region = 89 }
 0x17d   :  { %468 = vsyncpa [#allocation3], 1 }
 0x17e   :  { %470 = vsyncpa [#allocation3 + $0x1], 1 }
 0x17f   :  { %471 = vsyncpa [#allocation6], 1 }
 0x180   :  { %472 = vsyncpa [#allocation4], 1 }
 0x181   :  { %474 = vsyncpa [#allocation4 + $0x1], 1 }

// kernel: tpu_custom_call.1
= control target key start
LH: loop header
LB: loop body
LE: loop exit
PB: predicated region body
PF: predicated region fallthrough
CT: control target
= control target key end

     0   :  { %9 = vsyncpa [#allocation3], 0  ;;  %s993_s0 = inlined_call_operand.hbm [shape: f32[32,128], index: 0, kind: input, shape index: {}]   ;;  %s994_s1 = inlined_call_operand.hbm [shape: f32[128,256], index: 1, kind: input, shape index: {}]   ;;  %s995_s2 = inlined_call_operand.hbm [shape: f32[256,128], index: 2, kind: input, shape index: {}]   ;;  %s996_s3 = inlined_call_operand.vmem [shape: f32[1,256], index: 3, kind: input, shape index: {}]   ;;  %s997_s4 = inlined_call_operand.hbm [shape: f32[32,128], index: 4, kind: output, shape index: {}]  }
   0x1   :  { %11 = vsyncpa [#allocation3 + $0x1], 0 }
   0x2   :  { %12 = vsyncpa [#allocation6], 0 }
   0x3   :  { %13 = vsyncpa [#allocation4], 0 }
   0x4   :  { %15 = vsyncpa [#allocation4 + $0x1], 0  ;;  %s835_s15 = smov 0   ;;  %s837_s16 = smov 0  }
   0x5   :  { %s839_s17 = smov 0   ;;  %s841_s18 = smov 0  }
   0x6 LB: > { %s856_s19 = sadd.s32 4294967295, %s800_s18   ;;  %s539_s20 = sadd.s32 4294967294, %s800_s18   ;;  %s800_s18 = sphi %s841_s18, %s1007_s18   ;;  %s796_s17 = sphi %s839_s17, %s1006_s17   ;;  %s792_s16 = sphi %s837_s16, %s1005_s16   ;;  %s788_s15 = sphi %s835_s15, %s1004_s15  }
   0x7   : > { %p41_p0 = scmp.ne.s32.totalorder %s792_s16, %s788_s15  ;;  %p42_p1 = scmp.eq.s32.totalorder %s856_s19, 0 }
   0x8   : > { %p128_p2 = scmp.eq.s32.totalorder %s856_s19, 1  ;;  %p134_p3 = scmp.eq.s32.totalorder %s539_s20, 1 }
   0x9   : > { %p865_p4 = por %p42_p1, %p41_p0  ;;  %p540_p5 = scmp.ge.s32.totalorder %s800_s18, 1 }
   0xa   : > { %p870_p6 = por %p134_p3, %p41_p0  ;;  %p141_p7 = scmp.lt.s32.totalorder %s800_s18, 3 }
   0xb   : > { %s152_s25 = sshll.u32 %s994_s1, 4  ;;  %s802_s27 = smov [#allocation5]   ;;  %s153_s25 = int_to_ptr.hbm [resolvable:$true] %s152_s25 }
   0xc   : > { %p878_p8 = pnand %p540_p5, %p141_p7  ;;  %s154_s28 = sshll.u32 %s802_s27, 4  ;;  %s155_s28 = int_to_ptr.vmem [resolvable:$true] %s154_s28 }
   0xd   : > { %s166_s5 = sshll.u32 %s995_s2, 4  ;;  %s803_s6 = smov 256   ;;  %s167_s5 = int_to_ptr.hbm [resolvable:$true] %s166_s5 }
   0xe   : > { %p571_p9 = pneg %p878_p8  ;;  %s804_s7 = smov 16  }
   0xf   : > { %s805_s8 = smov [#allocation7]   ;;  %s806_s10 = smov 128  }
  0x10   : > { %p572_p10 = pnand %p571_p9, %p42_p1  ;;  %s168_s9 = sshll.u32 %s805_s8, 4  ;;  %s169_s9 = int_to_ptr.vmem [resolvable:$true] %s168_s9 }
  0x11   : > { %s807_s11 = smov 8   ;;  %s894_s12 = sadd.s32 1, %s800_s18  }
  0x12   : > { %574 = dma.hbm_to_vmem [thread:$0]  (!%p572_p10), %s153_s25, 4096, %s155_s28, [#allocation6], %s803_s6, %s803_s6, %s804_s7  }
  0x13   : > { %577 = dma.hbm_to_vmem [thread:$0]  (!%p572_p10), %s167_s5, 4096, %s169_s9, [#allocation6], %s806_s10, %s806_s10, %s807_s11  }
  0x14   : > { %s25_s13 = ssub.s32 %s800_s18, %s894_s12  ;;  %s28_s14 = sadd.s32 1, %s796_s17 }
  0x15   : > { %p26_p12 = scmp.eq.s32.totalorder %s25_s13, 0  ;;  %p35_p13 = scmp.ne.s32.totalorder %s796_s17, %s792_s16 }
  0x16   : > { %p36_p0 = scmp.eq.s32.totalorder %s800_s18, 0  ;;  %p588_p7 = scmp.lt.s32.totalorder %s800_s18, 2 }
  0x17   : > { %s903_s20 = scalar_select %p26_p12, %s796_s17, %s28_s14  }
  0x18   : > { %p37_p3 = por %p36_p0, %p35_p13  ;;  %p907_p5 = por %p128_p2, %p35_p13 }
  0x19   : > { %s185_s24 = sand.u32 1, %s796_s17   ;;  %s557_s27 = sshll.u32 %s800_s18, 4 }
  0x1a   : > { %s544_s25 = sshll.u32 %s185_s24, 4  ;;  %s194_s30 = scalar_lea.hbm %s993_s0, %s557_s27 }
  0x1b   : > { %s189_s5 = scalar_lea.vmem [#allocation2], %s544_s25  ;;  %s195_s7 = sshll.u32 %s194_s30, 4  ;;  %s196_s7 = int_to_ptr.hbm [resolvable:$true] %s195_s7 }
  0x1c   : > { %s197_s6 = sshll.u32 %s189_s5, 4  ;;  %p917_p9 = pnand %p588_p7, %p37_p3  ;;  %s198_s6 = int_to_ptr.vmem [resolvable:$true] %s197_s6 }
  0x1d   : > { %s186_s9 = scalar_lea.sflag [#allocation3], %s185_s24  ;;  %s700_s13 = sshra.s32 %s196_s7, 4  ;;  %s701_s13 = int_to_ptr.hbm [resolvable:$true] %s700_s13 }
  0x1e   : > { %s702_s14 = scalar_lea.hbm %s701_s13, 16  ;;  %p704_p10 = pneg %p917_p9 }
  0x1f   : > { %p703_p2 = scmp.ne.s32.totalorder %s701_s13, %s702_s14  ;;  %s707_s28 = scalar_lea.hbm %s993_s0, 32 }
  0x20   : > { %p708_p0 = scmp.lt.s32.totalorder %s701_s13, %s993_s0  ;;  %p709_p3 = scmp.lt.s32.totalorder %s707_s28, %s702_s14 }
  0x21   : > { %p705_p12 = pnand %p704_p10, %p703_p2 }
  0x22   : > { %p710_p7 = por %p709_p3, %p708_p0 }
  0x23   : > { %p706_p13 = pneg %p705_p12 }
  0x25   : > { %p711_p11 = pnand %p710_p7, %p706_p13 }
  0x27   : > { %714 = shalt.err (!%p711_p11)
}
  0x28   : > { %581 = dma.hbm_to_vmem [thread:$0]  (!%p917_p9), %s196_s7, 256, %s198_s6, %s186_s9, %s806_s10, %s806_s10, %s807_s11  }
  0x29   : > { %209 = sbr.rel (%p878_p8) target bundleno = 367 (0x16f), region = 36  ;;  %s937_s24 = sand.u32 (!%p878_p8), 1, %s792_s16  }
  0x2a   : > { %s548_s5 = sshll.u32 (!%p878_p8), %s937_s24, 4  ;;  %s212_s13 = scalar_lea.sflag (!%p878_p8), [#allocation3], %s937_s24 }
  0x2b   : > { %s943_s14 = scalar_lea.vmem (!%p878_p8), [#allocation2], %s548_s5 }
  0x2e   : > { %775 = dma.done.wait (%p865_p4), %s212_s13, 256  }
  0x2f   : > { %777 = vsyncadd (%p865_p4), %s212_s13, 4294967040 }
  0x30   : > { %779 = dma.done.wait (%p42_p1), [#allocation6], 8192  }
  0x31   : > { %781 = vsyncadd (%p42_p1), [#allocation6], 4294959104  ;;  %v285_v0 = vld [vmem:[#allocation5 + $0xf0] sm:$0xff]  ;;  %v286_v1 = vld [vmem:[#allocation5 + $0xf8] sm:$0xff]  ;;  %s558_s10 = sshll.u32 %s856_s19, 4  ;;  %s250_s8 = scalar_lea.vmem [#allocation8], %s548_s5 }
  0x32   : > { %v283_v2 = vld [vmem:[#allocation5 + $0xe0] sm:$0xff]  ;;  %293 = vmatpush.msra.mxu0 %v285_v0  ;;  %316 = vmatpush.msra.mxu1 %v286_v1  ;;  %v284_v3 = vld [vmem:[#allocation5 + $0xe8] sm:$0xff]  ;;  %v281_v4 = vld [vmem:[#allocation5 + $0xd0] sm:$0xff]  ;;  %s443_s7 = scalar_lea.hbm %s997_s4, %s558_s10  ;;  %s444_s9 = sshll.u32 %s250_s8, 4  ;;  %s445_s9 = int_to_ptr.vmem [resolvable:$true] %s444_s9 }
  0x33   : > { %v282_v5 = vld [vmem:[#allocation5 + $0xd8] sm:$0xff]  ;;  %v279_v6 = vld [vmem:[#allocation5 + $0xc0] sm:$0xff]  ;;  %v280_v7 = vld [vmem:[#allocation5 + $0xc8] sm:$0xff]  ;;  %s446_s27 = sshll.u32 %s443_s7, 4  ;;  %s432_s25 = scalar_lea.sflag [#allocation4], %s937_s24  ;;  %s447_s27 = int_to_ptr.hbm [resolvable:$true] %s446_s27 }
  0x34   : > { %294 = vmatpush.msra.mxu0 %v283_v2  ;;  %317 = vmatpush.msra.mxu1 %v284_v3  ;;  %v277_v8 = vld [vmem:[#allocation5 + $0xb0] sm:$0xff]  ;;  %v278_v9 = vld [vmem:[#allocation5 + $0xb8] sm:$0xff]  ;;  %v275_v10 = vld [vmem:[#allocation5 + $0xa0] sm:$0xff]  ;;  %s744_s19 = sshra.s32 %s447_s27, 4  ;;  %s750_s5 = scalar_lea.hbm %s997_s4, 32  ;;  %s745_s19 = int_to_ptr.hbm [resolvable:$true] %s744_s19 }
  0x35   : > { %v276_v11 = vld [vmem:[#allocation5 + $0xa8] sm:$0xff]  ;;  %v273_v12 = vld [vmem:[#allocation5 + $0x90] sm:$0xff]  ;;  %v274_v13 = vld [vmem:[#allocation5 + $0x98] sm:$0xff]  ;;  %s746_s28 = scalar_lea.hbm %s745_s19, 16  ;;  %p751_p11 = scmp.lt.s32.totalorder %s745_s19, %s997_s4 }
  0x36   : > { %295 = vmatpush.msra.mxu0 %v281_v4  ;;  %318 = vmatpush.msra.mxu1 %v282_v5  ;;  %v271_v14 = vld [vmem:[#allocation5 + $0x80] sm:$0xff]  ;;  %v366_v15 = vld [vmem:[#allocation7 + $0x78] sm:$0xff]  ;;  %v272_v17 = vld [vmem:[#allocation5 + $0x88] sm:$0xff]  ;;  %p747_p1 = scmp.ne.s32.totalorder %s745_s19, %s746_s28  ;;  %p752_p9 = scmp.lt.s32.totalorder %s750_s5, %s746_s28 }
  0x37   : > { %v382_v16 = vld [vmem:[#allocation7 + $0xf8] sm:$0xff]  ;;  %383 = vmatpush.msra.mxu2 %v366_v15  ;;  %v365_v18 = vld [vmem:[#allocation7 + $0x70] sm:$0xff]  ;;  %v364_v20 = vld [vmem:[#allocation7 + $0x68] sm:$0xff] }
  0x38   : > { %296 = vmatpush.msra.mxu0 %v279_v6  ;;  %319 = vmatpush.msra.mxu1 %v280_v7  ;;  %v381_v19 = vld [vmem:[#allocation7 + $0xf0] sm:$0xff]  ;;  %v380_v21 = vld [vmem:[#allocation7 + $0xe8] sm:$0xff]  ;;  %v270_v23 = vld [vmem:[#allocation5 + $0x78] sm:$0xff]  ;;  %p748_p4 = pnand %p747_p1, %p907_p5  ;;  %p753_p2 = por %p752_p9, %p751_p11 }
  0x39   : > { %406 = vmatpush.msra.mxu3 %v382_v16  ;;  %v269_v22 = vld [vmem:[#allocation5 + $0x70] sm:$0xff]  ;;  %384 = vmatpush.msra.mxu2 %v365_v18  ;;  %v363_v24 = vld [vmem:[#allocation7 + $0x60] sm:$0xff]  ;;  %v268_v27 = vld [vmem:[#allocation5 + $0x68] sm:$0xff] }
  0x3a   : > { %297 = vmatpush.msra.mxu0 %v277_v8  ;;  %320 = vmatpush.msra.mxu1 %v278_v9  ;;  %v379_v25 = vld [vmem:[#allocation7 + $0xe0] sm:$0xff]  ;;  %v362_v28 = vld [vmem:[#allocation7 + $0x58] sm:$0xff]  ;;  %v265_v30 = vld [vmem:[#allocation5 + $0x50] sm:$0xff]  ;;  %p749_p8 = pneg %p748_p4 }
  0x3b   : > { %407 = vmatpush.msra.mxu3 %v381_v19  ;;  %v267_v26 = vld [vmem:[#allocation5 + $0x60] sm:$0xff]  ;;  %385 = vmatpush.msra.mxu2 %v364_v20  ;;  %v378_v29 = vld [vmem:[#allocation7 + $0xd8] sm:$0xff]  ;;  %v361_v32 = vld [vmem:[#allocation7 + $0x50] sm:$0xff] }
  0x3c   : > { %298 = vmatpush.msra.mxu0 %v275_v10  ;;  %321 = vmatpush.msra.mxu1 %v276_v11  ;;  %v266_v31 = vld [vmem:[#allocation5 + $0x58] sm:$0xff]  ;;  %v377_v33 = vld [vmem:[#allocation7 + $0xd0] sm:$0xff]  ;;  %v263_v34 = vld [vmem:[#allocation5 + $0x40] sm:$0xff]  ;;  %p754_p10 = pnand %p753_p2, %p749_p8 }
  0x3d   : > { %408 = vmatpush.msra.mxu3 %v380_v21  ;;  %386 = vmatpush.msra.mxu2 %v363_v24  ;;  %v264_v35 = vld [vmem:[#allocation5 + $0x48] sm:$0xff]  ;;  %v261_v38 = vld [vmem:[#allocation5 + $0x30] sm:$0xff]  ;;  %v262_v39 = vld [vmem:[#allocation5 + $0x38] sm:$0xff] }
  0x3e   : > { %299 = vmatpush.msra.mxu0 %v273_v12  ;;  %322 = vmatpush.msra.mxu1 %v274_v13  ;;  %v360_v36 = vld [vmem:[#allocation7 + $0x48] sm:$0xff]  ;;  %v359_v40 = vld [vmem:[#allocation7 + $0x40] sm:$0xff]  ;;  %v358_v44 = vld [vmem:[#allocation7 + $0x38] sm:$0xff] }
  0x3f   : > { %409 = vmatpush.msra.mxu3 %v379_v25  ;;  %387 = vmatpush.msra.mxu2 %v362_v28  ;;  %v376_v37 = vld [vmem:[#allocation7 + $0xc8] sm:$0xff]  ;;  %v375_v41 = vld [vmem:[#allocation7 + $0xc0] sm:$0xff]  ;;  %v374_v45 = vld [vmem:[#allocation7 + $0xb8] sm:$0xff] }
  0x40   : > { %300 = vmatpush.msra.mxu0 %v271_v14  ;;  %323 = vmatpush.msra.mxu1 %v272_v17  ;;  %v259_v42 = vld [vmem:[#allocation5 + $0x20] sm:$0xff]  ;;  %v260_v43 = vld [vmem:[#allocation5 + $0x28] sm:$0xff]  ;;  %v257_v46 = vld [vmem:[#allocation5 + $0x10] sm:$0xff] }
  0x41   : > { %410 = vmatpush.msra.mxu3 %v378_v29  ;;  %388 = vmatpush.msra.mxu2 %v361_v32  ;;  %v258_v47 = vld [vmem:[#allocation5 + $0x18] sm:$0xff]  ;;  %v255_v48 = vld [vmem:[#allocation5] sm:$0xff]  ;;  %v256_v49 = vld [vmem:[#allocation5 + $0x8] sm:$0xff] }
  0x42   : > { %301 = vmatpush.msra.mxu0 %v269_v22  ;;  %324 = vmatpush.msra.mxu1 %v270_v23  ;;  %v253_v50 = vld [vmem:[%s943_s14] sm:$0xff]  ;;  %v254_v51 = vld [vmem:[%s943_s14 + $0x8] sm:$0xff] }
  0x43   : > { %411 = vmatpush.msra.mxu3 %v377_v33  ;;  %389 = vmatpush.msra.mxu2 %v360_v36  ;;  %v357_v52 = vld [vmem:[#allocation7 + $0x30] sm:$0xff]  ;;  %v356_v54 = vld [vmem:[#allocation7 + $0x28] sm:$0xff]  ;;  %v355_v56 = vld [vmem:[#allocation7 + $0x20] sm:$0xff] }
  0x44   : > { %302 = vmatpush.msra.mxu0 %v267_v26  ;;  %325 = vmatpush.msra.mxu1 %v268_v27  ;;  %v373_v53 = vld [vmem:[#allocation7 + $0xb0] sm:$0xff]  ;;  %v372_v55 = vld [vmem:[#allocation7 + $0xa8] sm:$0xff]  ;;  %v371_v57 = vld [vmem:[#allocation7 + $0xa0] sm:$0xff] }
  0x45   : > { %412 = vmatpush.msra.mxu3 %v376_v37  ;;  %390 = vmatpush.msra.mxu2 %v359_v40  ;;  %v354_v58 = vld [vmem:[#allocation7 + $0x18] sm:$0xff]  ;;  %v353_v60 = vld [vmem:[#allocation7 + $0x10] sm:$0xff]  ;;  %v352_v62 = vld [vmem:[#allocation7 + $0x8] sm:$0xff] }
  0x46   : > { %303 = vmatpush.msra.mxu0 %v265_v30  ;;  %326 = vmatpush.msra.mxu1 %v266_v31  ;;  %v370_v59 = vld [vmem:[#allocation7 + $0x98] sm:$0xff]  ;;  %v369_v61 = vld [vmem:[#allocation7 + $0x90] sm:$0xff]  ;;  %v368_v63 = vld [vmem:[#allocation7 + $0x88] sm:$0xff] }
  0x47   : > { %413 = vmatpush.msra.mxu3 %v375_v41  ;;  %391 = vmatpush.msra.mxu2 %v358_v44  ;;  %v351_v0 = vld [vmem:[#allocation7] sm:$0xff] }
  0x48   : > { %304 = vmatpush.msra.mxu0 %v263_v34  ;;  %327 = vmatpush.msra.mxu1 %v264_v35  ;;  %v367_v1 = vld [vmem:[#allocation7 + $0x80] sm:$0xff] }
  0x49   : > { %414 = vmatpush.msra.mxu3 %v374_v45  ;;  %392 = vmatpush.msra.mxu2 %v357_v52  ;;  %v287_v2 = vld [vmem:[%s996_s3] sm:$0x3] }
  0x4a   : > { %305 = vmatpush.msra.mxu0 %v261_v38  ;;  %328 = vmatpush.msra.mxu1 %v262_v39  ;;  %v289_v3 = vperm.slane %v287_v2, 0  ;;  %v290_v4 = vperm.slane %v287_v2, 1 }
  0x4b   : > { %415 = vmatpush.msra.mxu3 %v373_v53  ;;  %393 = vmatpush.msra.mxu2 %v356_v54 }
  0x4c   : > { %306 = vmatpush.msra.mxu0 %v259_v42  ;;  %329 = vmatpush.msra.mxu1 %v260_v43 }
  0x4d   : > { %416 = vmatpush.msra.mxu3 %v372_v55  ;;  %394 = vmatpush.msra.mxu2 %v355_v56 }
  0x4e   : > { %307 = vmatpush.msra.mxu0 %v257_v46  ;;  %330 = vmatpush.msra.mxu1 %v258_v47 }
  0x4f   : > { %417 = vmatpush.msra.mxu3 %v371_v57  ;;  %395 = vmatpush.msra.mxu2 %v354_v58 }
  0x50   : > { %308 = vmatpush.msra.mxu0 %v255_v48  ;;  %331 = vmatpush.msra.mxu1 %v256_v49 }
  0x51   : > { %309 = vmatmul.f32.vlgmr.msra.gmra.mxu0 %v253_v50  ;;  %332 = vmatmul.f32.vlgmr.msra.gmra.mxu1 %v253_v50 }
  0x52   : > { %418 = vmatpush.msra.mxu3 %v370_v59  ;;  %396 = vmatpush.msra.mxu2 %v353_v60 }
  0x54   : > { %419 = vmatpush.msra.mxu3 %v369_v61  ;;  %397 = vmatpush.msra.mxu2 %v352_v62 }
  0x56   : > { %420 = vmatpush.msra.mxu3 %v368_v63  ;;  %398 = vmatpush.msra.mxu2 %v351_v0 }
  0x58   : > { %421 = vmatpush.msra.mxu3 %v367_v1 }
  0x59   : > { %312 = vmatmul.f32.gmra.mxu0 %v254_v51  ;;  %335 = vmatmul.f32.gmra.mxu1 %v254_v51 }
  0xce   : > { %v310_v5 = vpop.f32.mrf.mxu0  ;;  %v333_v6 = vpop.f32.mrf.mxu1 }
  0xcf   : > { %v311_v7 = vadd.f32 %v310_v5, %v289_v3  ;;  %v334_v8 = vadd.f32 %v333_v6, %v290_v4 }
  0xd1   : > { %632 = vtanh.f32 %v311_v7 }
  0xd2   : > { %634 = vtanh.f32 %v334_v8 }
  0xd6   : > { %v313_v9 = vpop.f32.mrf.mxu0  ;;  %v336_v10 = vpop.f32.mrf.mxu1 }
  0xd7   : > { %v633_v11 = vpop.eup %632  ;;  %v314_v12 = vadd.f32 %v313_v9, %v289_v3  ;;  %v337_v13 = vadd.f32 %v336_v10, %v290_v4 }
  0xd8   : > { %v635_v14 = vpop.eup %634  ;;  %v343_v15 = vmul.f32 %v633_v11, %v633_v11 }
  0xd9   : > { %636 = vtanh.f32 %v314_v12  ;;  %v344_v16 = vmul.f32 %v635_v14, %v635_v14 }
  0xda   : > { %638 = vtanh.f32 %v337_v13  ;;  %v347_v17 = vsub.f32 1.0, %v343_v15 }
  0xdb   : > { %v348_v18 = vsub.f32 1.0, %v344_v16 }
  0xdc   : > { %399 = vmatmul.f32.vlgmr.msra.gmra.mxu2 %v347_v17 }
  0xdd   : > { %422 = vmatmul.f32.vlgmr.msra.gmra.mxu3 %v348_v18 }
  0xdf   : > { %v637_v19 = vpop.eup %636 }
  0xe0   : > { %v639_v20 = vpop.eup %638  ;;  %v345_v21 = vmul.f32 %v637_v19, %v637_v19 }
  0xe1   : > { %v346_v22 = vmul.f32 %v639_v20, %v639_v20 }
  0xe2   : > { %v349_v23 = vsub.f32 1.0, %v345_v21 }
  0xe3   : > { %v350_v24 = vsub.f32 1.0, %v346_v22 }
  0xe4   : > { %402 = vmatmul.f32.gmra.mxu2 %v349_v23 }
  0xe5   : > { %425 = vmatmul.f32.gmra.mxu3 %v350_v24 }
 0x15f   : > { %v400_v25 = vpop.f32.mrf.mxu2 }
 0x160   : > { %v423_v26 = vpop.f32.mrf.mxu3 }
 0x161   : > { %v424_v27 = vadd.f32 %v423_v26, %v400_v25 }
 0x163   : > { %429 = vst [vmem:[%s250_s8] sm:$0xff] %v424_v27 }
 0x167   : > { %v403_v28 = vpop.f32.mrf.mxu2 }
 0x168   : > { %v426_v29 = vpop.f32.mrf.mxu3 }
 0x169   : > { %v427_v30 = vadd.f32 %v426_v29, %v403_v28 }
 0x16b   : > { %430 = vst [vmem:[%s250_s8 + $0x8] sm:$0xff] %v427_v30 }
 0x16c   : > { %757 = shalt.err (!%p754_p10)
}
 0x16d   : > { %s808_s24 = smov 128   ;;  %s809_s21 = smov 8  }
 0x16e   : > { %569 = dma.vmem_to_hbm [thread:$0]  (%p907_p5), %s445_s9, 256, %s447_s27, %s432_s25, %s808_s24, %s808_s24, %s809_s21  }
 0x16f PF: > { %s461_s26 = sand.u32 1, %s788_s15   ;;  %p1003_p12 = scmp.ge.s32.totalorder %s800_s18, 2 }
 0x170   : > { %s462_s10 = scalar_lea.sflag [#allocation4], %s461_s26 }
 0x171   : > { %p583_p13 = pnand %p1003_p12, %p870_p6 }
 0x173   : > { %p584_p0 = pneg %p583_p13 }
 0x175   : > { %783 = dma.done.wait (%p584_p0), %s462_s10, 256  }
 0x176   : > { %785 = vsyncadd (%p584_p0), %s462_s10, 4294967040  ;;  %p18_p3 = scmp.ge.s32.totalorder %s894_s12, 4   ;;  %s1004_s15 = smov %s792_s16 }
 0x177   : > { %s1005_s16 = smov %s796_s17  ;;  %s1006_s17 = smov %s903_s20 }
 0x178   : > { %s1007_s18 = smov %s894_s12  ;;  %20 = sbr.rel (!%p18_p3) target bundleno = 6 (0x6), region = 89 }
 0x17d   :  { %468 = vsyncpa [#allocation3], 1 }
 0x17e   :  { %470 = vsyncpa [#allocation3 + $0x1], 1 }
 0x17f   :  { %471 = vsyncpa [#allocation6], 1 }
 0x180   :  { %472 = vsyncpa [#allocation4], 1 }
 0x181   :  { %474 = vsyncpa [#allocation4 + $0x1], 1 }

</bundles_post_ra>
